<compile_context>
chip_gen: v7x
topology: tpu7x:2x2x1
jax: 0.10.0
libtpu: 0.0.40
codegen_flags: <defaults>
</compile_context>

<pallas_src>
import jax
import jax.numpy as jnp
import numpy as np
from jax import lax
from jax.experimental import pallas as pl
from jax.experimental.pallas import tpu as pltpu


def _round_up(x, m):
    return ((x + m - 1) // m) * m


def _rnn_shakespeare_kernel(tok_ref,    # ((T+1)*Bp, 1) int32 time-major tokens (+1 dummy step)
                            wemb_ref,   # (Vp, 8H)  emb-folded layer-0 input proj (layer-interleaved cols)
                            bias_ref,   # (1, 8H)   [b0 | b1] in the same interleaved layout
                            wbig_ref,   # (2H, 8H)  fused skewed recurrent weight [[Whh0,Wih1],[0,Whh1]]
                            wfc_ref,    # (H, Vp)   FC weights (vocab padded)
                            bfc_ref,    # (1, Vp)   FC bias (vocab padded)
                            out_ref):   # (Bp, Vp)  logits (padded, lane-dense)
    TB1 = tok_ref.shape[0]
    Vp, G8 = wemb_ref.shape            # G8 = 8H
    H = G8 // 8
    B = out_ref.shape[0]               # padded batch
    T = TB1 // B - 1                   # real timesteps (last block is a dummy)

    # ---- prologue (off the serial chain): one-hot gather of the emb-folded
    # ---- layer-0 projection for all T+1 timesteps, biases folded in --------
    tok = tok_ref[...]                                                 # (TB1, 1)
    onehot = (tok == lax.broadcasted_iota(jnp.int32, (TB1, Vp), 1)
              ).astype(jnp.float32)                                    # (TB1, Vp)
    aux_all = jnp.dot(onehot, wemb_ref[...],
                      preferred_element_type=jnp.float32) + bias_ref[...]  # (TB1, 8H)

    wbig = wbig_ref[...]                                               # (2H, 8H)

    # Gate layout (width H each): [i0, i1, f0, f1, g0, g1, o0, o1]
    lane8 = lax.broadcasted_iota(jnp.int32, (B, G8), 1)
    is_g = (lane8 >= 4 * H) & (lane8 < 6 * H)          # tanh ("g") lanes
    gate_scale = jnp.where(is_g, 1.0, 0.5)             # hoisted activation scale
    lane2 = lax.broadcasted_iota(jnp.int32, (B, 2 * H), 1)
    is_l0 = lane2 < H                                   # layer-0 half of packed state

    def combined_cell(gates, ccat):
        # Single full-width tanh; sigmoid(x) = 0.5*(tanh(x/2)+1) on non-g lanes.
        tt = jnp.tanh(gates * gate_scale)
        act = jnp.where(is_g, tt, 0.5 * tt + 0.5)
        i = act[:, 0 * H:2 * H]
        f = act[:, 2 * H:4 * H]
        g = act[:, 4 * H:6 * H]
        o = act[:, 6 * H:8 * H]
        c_new = f * ccat + i * g
        h_new = o * jnp.tanh(c_new)                     # one 2H-wide tanh for both layers
        return h_new, c_new

    zero2 = jnp.zeros((B, 2 * H), jnp.float32)

    # Layer-0 cell for t=0 (h0_prev = c0_prev = 0, so no recurrent matmul).
    # Run the combined cell on aux block 0, then zero the layer-1 half of the
    # packed state (layer 1 has not executed yet).
    h_tmp, c_tmp = combined_cell(aux_all[0:B, :], zero2)
    hcat = jnp.where(is_l0, h_tmp, 0.0)                 # [h0[0], 0]
    ccat = jnp.where(is_l0, c_tmp, 0.0)                 # [c0[0], 0]

    # ---- layer-skewed fused recurrence: ONE matmul per step on the chain ----
    # Invariant entering iteration t: hcat = [h0[t], h1[t-1]], ccat = [c0[t], c1[t-1]].
    # T is a small compile-time constant: fully unrolled straight-line code.
    for t in range(T):
        big = jnp.dot(hcat, wbig, preferred_element_type=jnp.float32)  # (B, 8H)
        gates = big + aux_all[(t + 1) * B:(t + 2) * B, :]
        hcat, ccat = combined_cell(gates, ccat)
        # now hcat = [h0[t+1], h1[t]], ccat = [c0[t+1], c1[t]]
        # (for t == T-1 the layer-0 half uses the dummy token block and is unused)

    h1_last = hcat[:, H:2 * H]                           # h1[T-1]
    logits = jnp.dot(h1_last, wfc_ref[...],
                     preferred_element_type=jnp.float32) + bfc_ref[...]
    out_ref[...] = logits.astype(out_ref.dtype)


def prepare_kernel_params(params):
    """One-time host-side prep: fold embedding into layer-0 projection, build the
    layer-skewed fused recurrent weight, permute gate columns to the
    layer-interleaved [i0,i1,f0,f1,g0,g1,o0,o1] layout, pad FC to 128 lanes."""
    emb = params["emb"]                                  # (V, E)
    V, _E = emb.shape
    H = params["whh0_t"].shape[0]
    Vp = _round_up(V, 128)
    G8 = 8 * H

    def scatter_layer(dst, src, layer):
        # place gate blocks of `src` (.., 4H) into the interleaved 8H layout
        for gate in range(4):
            lo = (2 * gate + layer) * H
            dst = dst.at[:, lo:lo + H].set(src[:, gate * H:(gate + 1) * H])
        return dst

    # Embedding folded into the layer-0 input projection (exact f32 fold).
    emb_pad = jnp.zeros((Vp, emb.shape[1]), jnp.float32).at[:V, :].set(emb)
    w_emb0 = jnp.dot(emb_pad, params["wih0_t"],
                     precision=jax.lax.Precision.HIGHEST)          # (Vp, 4H)
    wemb_big = scatter_layer(jnp.zeros((Vp, G8), jnp.float32), w_emb0, 0)

    bias_big = scatter_layer(jnp.zeros((1, G8), jnp.float32), params["b0"], 0)
    bias_big = scatter_layer(bias_big, params["b1"], 1)

    # Fused, layer-skewed recurrent weight: [h0[t], h1[t-1]] @ w_big yields
    # (layer-0 recurrent term for step t+1 | layer-1 gate pre-acts for step t).
    top = scatter_layer(jnp.zeros((H, G8), jnp.float32), params["whh0_t"], 0)
    top = scatter_layer(top, params["wih1_t"], 1)
    bot = scatter_layer(jnp.zeros((H, G8), jnp.float32), params["whh1_t"], 1)
    w_big = jnp.concatenate([top, bot], axis=0)                     # (2H, 8H)

    wfc_p = jnp.zeros((H, Vp), jnp.float32).at[:, :V].set(params["wfc_t"])
    bfc_p = jnp.zeros((1, Vp), jnp.float32).at[:, :V].set(params["bfc"])

    return dict(wemb_big=wemb_big, bias_big=bias_big, w_big=w_big,
                wfc=wfc_p, bfc=bfc_p)


def rnn_shakespeare_forward(tokens, kparams, *, vocab_size):
    """tokens: (B, T) int32. Returns logits (B, vocab_size) float32."""
    B, T = tokens.shape
    Vp = kparams["wemb_big"].shape[0]
    Bp = _round_up(B, 8)                                 # sublane-align batch

    # Pad batch to Bp, add one dummy timestep (for the layer-skew epilogue),
    # go time-major and flatten.  This tiny int reformat fuses under jit.
    tok_p = jnp.zeros((Bp, T + 1), jnp.int32).at[:B, :T].set(tokens)
    tok_col = tok_p.T.reshape((T + 1) * Bp, 1)           # row r = t*Bp + b

    vmem = lambda: pl.BlockSpec(memory_space=pltpu.MemorySpace.VMEM)
    out = pl.pallas_call(
        _rnn_shakespeare_kernel,
        out_shape=jax.ShapeDtypeStruct((Bp, Vp), jnp.float32),
        in_specs=[vmem() for _ in range(6)],
        out_specs=vmem(),
    )(tok_col, kparams["wemb_big"], kparams["bias_big"], kparams["w_big"],
      kparams["wfc"], kparams["bfc"])
    return out[:B, :vocab_size]


def init_params(key, vocab_size=80, embedding_dim=8, hidden_size=32):
    """Deterministic synthetic parameters matching the PyTorch module's shapes."""
    V, E, H = vocab_size, embedding_dim, hidden_size
    keys = jax.random.split(key, 12)
    s = 0.1

    emb = s * jax.random.normal(keys[0], (V, E), jnp.float32)
    emb = emb.at[0].set(0.0)                      # padding_idx=0

    # PyTorch LSTM stores weight_ih_l{k}: (4H, in), weight_hh_l{k}: (4H, H).
    # We pre-transpose so the math is x @ W (gate order i, f, g, o).
    wih0_t = s * jax.random.normal(keys[1], (E, 4 * H), jnp.float32)
    whh0_t = s * jax.random.normal(keys[2], (H, 4 * H), jnp.float32)
    b0 = (s * jax.random.normal(keys[3], (1, 4 * H), jnp.float32)
          + s * jax.random.normal(keys[4], (1, 4 * H), jnp.float32))  # b_ih + b_hh

    wih1_t = s * jax.random.normal(keys[5], (H, 4 * H), jnp.float32)
    whh1_t = s * jax.random.normal(keys[6], (H, 4 * H), jnp.float32)
    b1 = (s * jax.random.normal(keys[7], (1, 4 * H), jnp.float32)
          + s * jax.random.normal(keys[8], (1, 4 * H), jnp.float32))

    wfc_t = s * jax.random.normal(keys[9], (H, V), jnp.float32)
    bfc = s * jax.random.normal(keys[10], (1, V), jnp.float32)

    return dict(emb=emb, wih0_t=wih0_t, whh0_t=whh0_t, b0=b0,
                wih1_t=wih1_t, whh1_t=whh1_t, b1=b1, wfc_t=wfc_t, bfc=bfc)


def reference_forward(tokens, params):
    """Pure-JAX reference (mirrors torch.nn.LSTM semantics, gate order i,f,g,o)."""
    emb = jnp.take(params["emb"], tokens, axis=0)        # (B, T, E)
    B, T, E = emb.shape
    H = params["whh0_t"].shape[0]

    def cell(x, h, c, wih_t, whh_t, b):
        gates = x @ wih_t + h @ whh_t + b
        i = jax.nn.sigmoid(gates[:, 0 * H:1 * H])
        f = jax.nn.sigmoid(gates[:, 1 * H:2 * H])
        g = jnp.tanh(gates[:, 2 * H:3 * H])
        o = jax.nn.sigmoid(gates[:, 3 * H:4 * H])
        c_new = f * c + i * g
        return o * jnp.tanh(c_new), c_new

    def step(carry, x_t):
        h0, c0, h1, c1 = carry
        h0, c0 = cell(x_t, h0, c0, params["wih0_t"], params["whh0_t"], params["b0"])
        h1, c1 = cell(h0, h1, c1, params["wih1_t"], params["whh1_t"], params["b1"])
        return (h0, c0, h1, c1), h1

    z = jnp.zeros((B, H), jnp.float32)
    (_, _, h1, _), _ = lax.scan(step, (z, z, z, z), jnp.transpose(emb, (1, 0, 2)))
    return h1 @ params["wfc_t"] + params["bfc"]


if __name__ == "__main__":
    key = jax.random.PRNGKey(0)
    pkey, tkey = jax.random.split(key)

    # Small shapes consistent with the module's forward:
    # batch=2, seq=8, vocab=80, embedding_dim=8, hidden=32.
    B, T, V, E, H = 2, 8, 80, 8, 32
    params = init_params(pkey, vocab_size=V, embedding_dim=E, hidden_size=H)
    tokens = jax.random.randint(tkey, (B, T), 0, V, dtype=jnp.int32)

    kparams = prepare_kernel_params(params)
    fwd = jax.jit(rnn_shakespeare_forward, static_argnames=("vocab_size",))

    out = jax.block_until_ready(fwd(tokens, kparams, vocab_size=V))

    ref = jax.block_until_ready(reference_forward(tokens, params))
    np.testing.assert_allclose(np.asarray(out), np.asarray(ref),
                               rtol=1e-5, atol=5e-5)
    assert out.shape == (B, V)
    print("KERNEL_OK")
</pallas_src>

<mosaic_0001>
module attributes {stable_mosaic.version = 11 : i64} {
  func.func @_rnn_shakespeare_kernel(%arg0: memref<72x1xi32, #tpu.memory_space<vmem>>, %arg1: memref<128x256xf32, #tpu.memory_space<vmem>>, %arg2: memref<1x256xf32, #tpu.memory_space<vmem>>, %arg3: memref<64x256xf32, #tpu.memory_space<vmem>>, %arg4: memref<32x128xf32, #tpu.memory_space<vmem>>, %arg5: memref<1x128xf32, #tpu.memory_space<vmem>>, %arg6: memref<8x128xf32, #tpu.memory_space<vmem>>) attributes {dimension_semantics = [], scalar_prefetch = 0 : i64, scratch_operands = 0 : i64, tpu.core_type = #tpu.core_type<tc>} {
    %c0 = arith.constant 0 : index
    %c0_0 = arith.constant 0 : index
    %0 = vector.load %arg0[%c0, %c0_0] : memref<72x1xi32, #tpu.memory_space<vmem>>, vector<72x1xi32>
    %1 = tpu.iota {dimensions = array<i32: 1>} : vector<72x128xi32>
    %2 = vector.broadcast %0 : vector<72x1xi32> to vector<72x128xi32>
    %3 = arith.cmpi eq, %2, %1 : vector<72x128xi32>
    %4 = arith.extui %3 : vector<72x128xi1> to vector<72x128xi32>
    %5 = arith.sitofp %4 : vector<72x128xi32> to vector<72x128xf32>
    %c0_1 = arith.constant 0 : index
    %c0_2 = arith.constant 0 : index
    %6 = vector.load %arg1[%c0_1, %c0_2] : memref<128x256xf32, #tpu.memory_space<vmem>>, vector<128x256xf32>
    %cst = arith.constant dense<0.000000e+00> : vector<72x256xf32>
    %7 = tpu.matmul %5, %6, %cst {dimension_numbers = #tpu.dot_dimension_numbers<[1], [0], [0], [1], [0, 0, 1, 1], [], []>} : vector<72x128xf32>, vector<128x256xf32>, vector<72x256xf32> -> vector<72x256xf32>
    %c0_3 = arith.constant 0 : index
    %c0_4 = arith.constant 0 : index
    %8 = vector.load %arg2[%c0_3, %c0_4] : memref<1x256xf32, #tpu.memory_space<vmem>>, vector<1x256xf32>
    %9 = vector.broadcast %8 : vector<1x256xf32> to vector<72x256xf32>
    %10 = arith.addf %7, %9 : vector<72x256xf32>
    %c0_5 = arith.constant 0 : index
    %c0_6 = arith.constant 0 : index
    %11 = vector.load %arg3[%c0_5, %c0_6] : memref<64x256xf32, #tpu.memory_space<vmem>>, vector<64x256xf32>
    %12 = tpu.iota {dimensions = array<i32: 1>} : vector<8x256xi32>
    %c128_i32 = arith.constant 128 : i32
    %13 = vector.broadcast %c128_i32 : i32 to vector<8x256xi32>
    %14 = arith.cmpi sge, %12, %13 : vector<8x256xi32>
    %c192_i32 = arith.constant 192 : i32
    %15 = vector.broadcast %c192_i32 : i32 to vector<8x256xi32>
    %16 = arith.cmpi slt, %12, %15 : vector<8x256xi32>
    %17 = arith.andi %14, %16 : vector<8x256xi1>
    %cst_7 = arith.constant 1.000000e+00 : f32
    %cst_8 = arith.constant 5.000000e-01 : f32
    %18 = vector.broadcast %cst_7 : f32 to vector<8x256xf32>
    %19 = vector.broadcast %cst_8 : f32 to vector<8x256xf32>
    %20 = arith.select %17, %18, %19 : vector<8x256xi1>, vector<8x256xf32>
    %21 = tpu.iota {dimensions = array<i32: 1>} : vector<8x64xi32>
    %c32_i32 = arith.constant 32 : i32
    %22 = vector.broadcast %c32_i32 : i32 to vector<8x64xi32>
    %23 = arith.cmpi slt, %21, %22 : vector<8x64xi32>
    %cst_9 = arith.constant 0.000000e+00 : f32
    %24 = vector.broadcast %cst_9 : f32 to vector<8x64xf32>
    %25 = vector.extract_strided_slice %10 {offsets = [0, 0], sizes = [8, 256], strides = [1, 1]} : vector<72x256xf32> to vector<8x256xf32>
    %26 = arith.mulf %25, %20 : vector<8x256xf32>
    %27 = math.tanh %26 : vector<8x256xf32>
    %cst_10 = arith.constant 5.000000e-01 : f32
    %28 = vector.broadcast %cst_10 : f32 to vector<8x256xf32>
    %29 = arith.mulf %28, %27 : vector<8x256xf32>
    %cst_11 = arith.constant 5.000000e-01 : f32
    %30 = vector.broadcast %cst_11 : f32 to vector<8x256xf32>
    %31 = arith.addf %29, %30 : vector<8x256xf32>
    %32 = arith.select %17, %27, %31 : vector<8x256xi1>, vector<8x256xf32>
    %33 = vector.extract_strided_slice %32 {offsets = [0, 0], sizes = [8, 64], strides = [1, 1]} : vector<8x256xf32> to vector<8x64xf32>
    %34 = vector.extract_strided_slice %32 {offsets = [0, 64], sizes = [8, 64], strides = [1, 1]} : vector<8x256xf32> to vector<8x64xf32>
    %35 = vector.extract_strided_slice %32 {offsets = [0, 128], sizes = [8, 64], strides = [1, 1]} : vector<8x256xf32> to vector<8x64xf32>
    %36 = vector.extract_strided_slice %32 {offsets = [0, 192], sizes = [8, 64], strides = [1, 1]} : vector<8x256xf32> to vector<8x64xf32>
    %37 = arith.mulf %34, %24 : vector<8x64xf32>
    %38 = arith.mulf %33, %35 : vector<8x64xf32>
    %39 = arith.addf %37, %38 : vector<8x64xf32>
    %40 = math.tanh %39 : vector<8x64xf32>
    %41 = arith.mulf %36, %40 : vector<8x64xf32>
    %cst_12 = arith.constant 0.000000e+00 : f32
    %42 = vector.broadcast %cst_12 : f32 to vector<8x64xf32>
    %43 = arith.select %23, %41, %42 : vector<8x64xi1>, vector<8x64xf32>
    %cst_13 = arith.constant 0.000000e+00 : f32
    %44 = vector.broadcast %cst_13 : f32 to vector<8x64xf32>
    %45 = arith.select %23, %39, %44 : vector<8x64xi1>, vector<8x64xf32>
    %cst_14 = arith.constant dense<0.000000e+00> : vector<8x256xf32>
    %46 = tpu.matmul %43, %11, %cst_14 {dimension_numbers = #tpu.dot_dimension_numbers<[1], [0], [0], [1], [0, 0, 1, 1], [], []>} : vector<8x64xf32>, vector<64x256xf32>, vector<8x256xf32> -> vector<8x256xf32>
    %47 = vector.extract_strided_slice %10 {offsets = [8, 0], sizes = [8, 256], strides = [1, 1]} : vector<72x256xf32> to vector<8x256xf32>
    %48 = arith.addf %46, %47 : vector<8x256xf32>
    %49 = arith.mulf %48, %20 : vector<8x256xf32>
    %50 = math.tanh %49 : vector<8x256xf32>
    %cst_15 = arith.constant 5.000000e-01 : f32
    %51 = vector.broadcast %cst_15 : f32 to vector<8x256xf32>
    %52 = arith.mulf %51, %50 : vector<8x256xf32>
    %cst_16 = arith.constant 5.000000e-01 : f32
    %53 = vector.broadcast %cst_16 : f32 to vector<8x256xf32>
    %54 = arith.addf %52, %53 : vector<8x256xf32>
    %55 = arith.select %17, %50, %54 : vector<8x256xi1>, vector<8x256xf32>
    %56 = vector.extract_strided_slice %55 {offsets = [0, 0], sizes = [8, 64], strides = [1, 1]} : vector<8x256xf32> to vector<8x64xf32>
    %57 = vector.extract_strided_slice %55 {offsets = [0, 64], sizes = [8, 64], strides = [1, 1]} : vector<8x256xf32> to vector<8x64xf32>
    %58 = vector.extract_strided_slice %55 {offsets = [0, 128], sizes = [8, 64], strides = [1, 1]} : vector<8x256xf32> to vector<8x64xf32>
    %59 = vector.extract_strided_slice %55 {offsets = [0, 192], sizes = [8, 64], strides = [1, 1]} : vector<8x256xf32> to vector<8x64xf32>
    %60 = arith.mulf %57, %45 : vector<8x64xf32>
    %61 = arith.mulf %56, %58 : vector<8x64xf32>
    %62 = arith.addf %60, %61 : vector<8x64xf32>
    %63 = math.tanh %62 : vector<8x64xf32>
    %64 = arith.mulf %59, %63 : vector<8x64xf32>
    %cst_17 = arith.constant dense<0.000000e+00> : vector<8x256xf32>
    %65 = tpu.matmul %64, %11, %cst_17 {dimension_numbers = #tpu.dot_dimension_numbers<[1], [0], [0], [1], [0, 0, 1, 1], [], []>} : vector<8x64xf32>, vector<64x256xf32>, vector<8x256xf32> -> vector<8x256xf32>
    %66 = vector.extract_strided_slice %10 {offsets = [16, 0], sizes = [8, 256], strides = [1, 1]} : vector<72x256xf32> to vector<8x256xf32>
    %67 = arith.addf %65, %66 : vector<8x256xf32>
    %68 = arith.mulf %67, %20 : vector<8x256xf32>
    %69 = math.tanh %68 : vector<8x256xf32>
    %cst_18 = arith.constant 5.000000e-01 : f32
    %70 = vector.broadcast %cst_18 : f32 to vector<8x256xf32>
    %71 = arith.mulf %70, %69 : vector<8x256xf32>
    %cst_19 = arith.constant 5.000000e-01 : f32
    %72 = vector.broadcast %cst_19 : f32 to vector<8x256xf32>
    %73 = arith.addf %71, %72 : vector<8x256xf32>
    %74 = arith.select %17, %69, %73 : vector<8x256xi1>, vector<8x256xf32>
    %75 = vector.extract_strided_slice %74 {offsets = [0, 0], sizes = [8, 64], strides = [1, 1]} : vector<8x256xf32> to vector<8x64xf32>
    %76 = vector.extract_strided_slice %74 {offsets = [0, 64], sizes = [8, 64], strides = [1, 1]} : vector<8x256xf32> to vector<8x64xf32>
    %77 = vector.extract_strided_slice %74 {offsets = [0, 128], sizes = [8, 64], strides = [1, 1]} : vector<8x256xf32> to vector<8x64xf32>
    %78 = vector.extract_strided_slice %74 {offsets = [0, 192], sizes = [8, 64], strides = [1, 1]} : vector<8x256xf32> to vector<8x64xf32>
    %79 = arith.mulf %76, %62 : vector<8x64xf32>
    %80 = arith.mulf %75, %77 : vector<8x64xf32>
    %81 = arith.addf %79, %80 : vector<8x64xf32>
    %82 = math.tanh %81 : vector<8x64xf32>
    %83 = arith.mulf %78, %82 : vector<8x64xf32>
    %cst_20 = arith.constant dense<0.000000e+00> : vector<8x256xf32>
    %84 = tpu.matmul %83, %11, %cst_20 {dimension_numbers = #tpu.dot_dimension_numbers<[1], [0], [0], [1], [0, 0, 1, 1], [], []>} : vector<8x64xf32>, vector<64x256xf32>, vector<8x256xf32> -> vector<8x256xf32>
    %85 = vector.extract_strided_slice %10 {offsets = [24, 0], sizes = [8, 256], strides = [1, 1]} : vector<72x256xf32> to vector<8x256xf32>
    %86 = arith.addf %84, %85 : vector<8x256xf32>
    %87 = arith.mulf %86, %20 : vector<8x256xf32>
    %88 = math.tanh %87 : vector<8x256xf32>
    %cst_21 = arith.constant 5.000000e-01 : f32
    %89 = vector.broadcast %cst_21 : f32 to vector<8x256xf32>
    %90 = arith.mulf %89, %88 : vector<8x256xf32>
    %cst_22 = arith.constant 5.000000e-01 : f32
    %91 = vector.broadcast %cst_22 : f32 to vector<8x256xf32>
    %92 = arith.addf %90, %91 : vector<8x256xf32>
    %93 = arith.select %17, %88, %92 : vector<8x256xi1>, vector<8x256xf32>
    %94 = vector.extract_strided_slice %93 {offsets = [0, 0], sizes = [8, 64], strides = [1, 1]} : vector<8x256xf32> to vector<8x64xf32>
    %95 = vector.extract_strided_slice %93 {offsets = [0, 64], sizes = [8, 64], strides = [1, 1]} : vector<8x256xf32> to vector<8x64xf32>
    %96 = vector.extract_strided_slice %93 {offsets = [0, 128], sizes = [8, 64], strides = [1, 1]} : vector<8x256xf32> to vector<8x64xf32>
    %97 = vector.extract_strided_slice %93 {offsets = [0, 192], sizes = [8, 64], strides = [1, 1]} : vector<8x256xf32> to vector<8x64xf32>
    %98 = arith.mulf %95, %81 : vector<8x64xf32>
    %99 = arith.mulf %94, %96 : vector<8x64xf32>
    %100 = arith.addf %98, %99 : vector<8x64xf32>
    %101 = math.tanh %100 : vector<8x64xf32>
    %102 = arith.mulf %97, %101 : vector<8x64xf32>
    %cst_23 = arith.constant dense<0.000000e+00> : vector<8x256xf32>
    %103 = tpu.matmul %102, %11, %cst_23 {dimension_numbers = #tpu.dot_dimension_numbers<[1], [0], [0], [1], [0, 0, 1, 1], [], []>} : vector<8x64xf32>, vector<64x256xf32>, vector<8x256xf32> -> vector<8x256xf32>
    %104 = vector.extract_strided_slice %10 {offsets = [32, 0], sizes = [8, 256], strides = [1, 1]} : vector<72x256xf32> to vector<8x256xf32>
    %105 = arith.addf %103, %104 : vector<8x256xf32>
    %106 = arith.mulf %105, %20 : vector<8x256xf32>
    %107 = math.tanh %106 : vector<8x256xf32>
    %cst_24 = arith.constant 5.000000e-01 : f32
    %108 = vector.broadcast %cst_24 : f32 to vector<8x256xf32>
    %109 = arith.mulf %108, %107 : vector<8x256xf32>
    %cst_25 = arith.constant 5.000000e-01 : f32
    %110 = vector.broadcast %cst_25 : f32 to vector<8x256xf32>
    %111 = arith.addf %109, %110 : vector<8x256xf32>
    %112 = arith.select %17, %107, %111 : vector<8x256xi1>, vector<8x256xf32>
    %113 = vector.extract_strided_slice %112 {offsets = [0, 0], sizes = [8, 64], strides = [1, 1]} : vector<8x256xf32> to vector<8x64xf32>
    %114 = vector.extract_strided_slice %112 {offsets = [0, 64], sizes = [8, 64], strides = [1, 1]} : vector<8x256xf32> to vector<8x64xf32>
    %115 = vector.extract_strided_slice %112 {offsets = [0, 128], sizes = [8, 64], strides = [1, 1]} : vector<8x256xf32> to vector<8x64xf32>
    %116 = vector.extract_strided_slice %112 {offsets = [0, 192], sizes = [8, 64], strides = [1, 1]} : vector<8x256xf32> to vector<8x64xf32>
    %117 = arith.mulf %114, %100 : vector<8x64xf32>
    %118 = arith.mulf %113, %115 : vector<8x64xf32>
    %119 = arith.addf %117, %118 : vector<8x64xf32>
    %120 = math.tanh %119 : vector<8x64xf32>
    %121 = arith.mulf %116, %120 : vector<8x64xf32>
    %cst_26 = arith.constant dense<0.000000e+00> : vector<8x256xf32>
    %122 = tpu.matmul %121, %11, %cst_26 {dimension_numbers = #tpu.dot_dimension_numbers<[1], [0], [0], [1], [0, 0, 1, 1], [], []>} : vector<8x64xf32>, vector<64x256xf32>, vector<8x256xf32> -> vector<8x256xf32>
    %123 = vector.extract_strided_slice %10 {offsets = [40, 0], sizes = [8, 256], strides = [1, 1]} : vector<72x256xf32> to vector<8x256xf32>
    %124 = arith.addf %122, %123 : vector<8x256xf32>
    %125 = arith.mulf %124, %20 : vector<8x256xf32>
    %126 = math.tanh %125 : vector<8x256xf32>
    %cst_27 = arith.constant 5.000000e-01 : f32
    %127 = vector.broadcast %cst_27 : f32 to vector<8x256xf32>
    %128 = arith.mulf %127, %126 : vector<8x256xf32>
    %cst_28 = arith.constant 5.000000e-01 : f32
    %129 = vector.broadcast %cst_28 : f32 to vector<8x256xf32>
    %130 = arith.addf %128, %129 : vector<8x256xf32>
    %131 = arith.select %17, %126, %130 : vector<8x256xi1>, vector<8x256xf32>
    %132 = vector.extract_strided_slice %131 {offsets = [0, 0], sizes = [8, 64], strides = [1, 1]} : vector<8x256xf32> to vector<8x64xf32>
    %133 = vector.extract_strided_slice %131 {offsets = [0, 64], sizes = [8, 64], strides = [1, 1]} : vector<8x256xf32> to vector<8x64xf32>
    %134 = vector.extract_strided_slice %131 {offsets = [0, 128], sizes = [8, 64], strides = [1, 1]} : vector<8x256xf32> to vector<8x64xf32>
    %135 = vector.extract_strided_slice %131 {offsets = [0, 192], sizes = [8, 64], strides = [1, 1]} : vector<8x256xf32> to vector<8x64xf32>
    %136 = arith.mulf %133, %119 : vector<8x64xf32>
    %137 = arith.mulf %132, %134 : vector<8x64xf32>
    %138 = arith.addf %136, %137 : vector<8x64xf32>
    %139 = math.tanh %138 : vector<8x64xf32>
    %140 = arith.mulf %135, %139 : vector<8x64xf32>
    %cst_29 = arith.constant dense<0.000000e+00> : vector<8x256xf32>
    %141 = tpu.matmul %140, %11, %cst_29 {dimension_numbers = #tpu.dot_dimension_numbers<[1], [0], [0], [1], [0, 0, 1, 1], [], []>} : vector<8x64xf32>, vector<64x256xf32>, vector<8x256xf32> -> vector<8x256xf32>
    %142 = vector.extract_strided_slice %10 {offsets = [48, 0], sizes = [8, 256], strides = [1, 1]} : vector<72x256xf32> to vector<8x256xf32>
    %143 = arith.addf %141, %142 : vector<8x256xf32>
    %144 = arith.mulf %143, %20 : vector<8x256xf32>
    %145 = math.tanh %144 : vector<8x256xf32>
    %cst_30 = arith.constant 5.000000e-01 : f32
    %146 = vector.broadcast %cst_30 : f32 to vector<8x256xf32>
    %147 = arith.mulf %146, %145 : vector<8x256xf32>
    %cst_31 = arith.constant 5.000000e-01 : f32
    %148 = vector.broadcast %cst_31 : f32 to vector<8x256xf32>
    %149 = arith.addf %147, %148 : vector<8x256xf32>
    %150 = arith.select %17, %145, %149 : vector<8x256xi1>, vector<8x256xf32>
    %151 = vector.extract_strided_slice %150 {offsets = [0, 0], sizes = [8, 64], strides = [1, 1]} : vector<8x256xf32> to vector<8x64xf32>
    %152 = vector.extract_strided_slice %150 {offsets = [0, 64], sizes = [8, 64], strides = [1, 1]} : vector<8x256xf32> to vector<8x64xf32>
    %153 = vector.extract_strided_slice %150 {offsets = [0, 128], sizes = [8, 64], strides = [1, 1]} : vector<8x256xf32> to vector<8x64xf32>
    %154 = vector.extract_strided_slice %150 {offsets = [0, 192], sizes = [8, 64], strides = [1, 1]} : vector<8x256xf32> to vector<8x64xf32>
    %155 = arith.mulf %152, %138 : vector<8x64xf32>
    %156 = arith.mulf %151, %153 : vector<8x64xf32>
    %157 = arith.addf %155, %156 : vector<8x64xf32>
    %158 = math.tanh %157 : vector<8x64xf32>
    %159 = arith.mulf %154, %158 : vector<8x64xf32>
    %cst_32 = arith.constant dense<0.000000e+00> : vector<8x256xf32>
    %160 = tpu.matmul %159, %11, %cst_32 {dimension_numbers = #tpu.dot_dimension_numbers<[1], [0], [0], [1], [0, 0, 1, 1], [], []>} : vector<8x64xf32>, vector<64x256xf32>, vector<8x256xf32> -> vector<8x256xf32>
    %161 = vector.extract_strided_slice %10 {offsets = [56, 0], sizes = [8, 256], strides = [1, 1]} : vector<72x256xf32> to vector<8x256xf32>
    %162 = arith.addf %160, %161 : vector<8x256xf32>
    %163 = arith.mulf %162, %20 : vector<8x256xf32>
    %164 = math.tanh %163 : vector<8x256xf32>
    %cst_33 = arith.constant 5.000000e-01 : f32
    %165 = vector.broadcast %cst_33 : f32 to vector<8x256xf32>
    %166 = arith.mulf %165, %164 : vector<8x256xf32>
    %cst_34 = arith.constant 5.000000e-01 : f32
    %167 = vector.broadcast %cst_34 : f32 to vector<8x256xf32>
    %168 = arith.addf %166, %167 : vector<8x256xf32>
    %169 = arith.select %17, %164, %168 : vector<8x256xi1>, vector<8x256xf32>
    %170 = vector.extract_strided_slice %169 {offsets = [0, 0], sizes = [8, 64], strides = [1, 1]} : vector<8x256xf32> to vector<8x64xf32>
    %171 = vector.extract_strided_slice %169 {offsets = [0, 64], sizes = [8, 64], strides = [1, 1]} : vector<8x256xf32> to vector<8x64xf32>
    %172 = vector.extract_strided_slice %169 {offsets = [0, 128], sizes = [8, 64], strides = [1, 1]} : vector<8x256xf32> to vector<8x64xf32>
    %173 = vector.extract_strided_slice %169 {offsets = [0, 192], sizes = [8, 64], strides = [1, 1]} : vector<8x256xf32> to vector<8x64xf32>
    %174 = arith.mulf %171, %157 : vector<8x64xf32>
    %175 = arith.mulf %170, %172 : vector<8x64xf32>
    %176 = arith.addf %174, %175 : vector<8x64xf32>
    %177 = math.tanh %176 : vector<8x64xf32>
    %178 = arith.mulf %173, %177 : vector<8x64xf32>
    %cst_35 = arith.constant dense<0.000000e+00> : vector<8x256xf32>
    %179 = tpu.matmul %178, %11, %cst_35 {dimension_numbers = #tpu.dot_dimension_numbers<[1], [0], [0], [1], [0, 0, 1, 1], [], []>} : vector<8x64xf32>, vector<64x256xf32>, vector<8x256xf32> -> vector<8x256xf32>
    %180 = vector.extract_strided_slice %10 {offsets = [64, 0], sizes = [8, 256], strides = [1, 1]} : vector<72x256xf32> to vector<8x256xf32>
    %181 = arith.addf %179, %180 : vector<8x256xf32>
    %182 = arith.mulf %181, %20 : vector<8x256xf32>
    %183 = math.tanh %182 : vector<8x256xf32>
    %cst_36 = arith.constant 5.000000e-01 : f32
    %184 = vector.broadcast %cst_36 : f32 to vector<8x256xf32>
    %185 = arith.mulf %184, %183 : vector<8x256xf32>
    %cst_37 = arith.constant 5.000000e-01 : f32
    %186 = vector.broadcast %cst_37 : f32 to vector<8x256xf32>
    %187 = arith.addf %185, %186 : vector<8x256xf32>
    %188 = arith.select %17, %183, %187 : vector<8x256xi1>, vector<8x256xf32>
    %189 = vector.extract_strided_slice %188 {offsets = [0, 0], sizes = [8, 64], strides = [1, 1]} : vector<8x256xf32> to vector<8x64xf32>
    %190 = vector.extract_strided_slice %188 {offsets = [0, 64], sizes = [8, 64], strides = [1, 1]} : vector<8x256xf32> to vector<8x64xf32>
    %191 = vector.extract_strided_slice %188 {offsets = [0, 128], sizes = [8, 64], strides = [1, 1]} : vector<8x256xf32> to vector<8x64xf32>
    %192 = vector.extract_strided_slice %188 {offsets = [0, 192], sizes = [8, 64], strides = [1, 1]} : vector<8x256xf32> to vector<8x64xf32>
    %193 = arith.mulf %190, %176 : vector<8x64xf32>
    %194 = arith.mulf %189, %191 : vector<8x64xf32>
    %195 = arith.addf %193, %194 : vector<8x64xf32>
    %196 = math.tanh %195 : vector<8x64xf32>
    %197 = arith.mulf %192, %196 : vector<8x64xf32>
    %198 = vector.extract_strided_slice %197 {offsets = [0, 32], sizes = [8, 32], strides = [1, 1]} : vector<8x64xf32> to vector<8x32xf32>
    %c0_38 = arith.constant 0 : index
    %c0_39 = arith.constant 0 : index
    %199 = vector.load %arg4[%c0_38, %c0_39] : memref<32x128xf32, #tpu.memory_space<vmem>>, vector<32x128xf32>
    %cst_40 = arith.constant dense<0.000000e+00> : vector<8x128xf32>
    %200 = tpu.matmul %198, %199, %cst_40 {dimension_numbers = #tpu.dot_dimension_numbers<[1], [0], [0], [1], [0, 0, 1, 1], [], []>} : vector<8x32xf32>, vector<32x128xf32>, vector<8x128xf32> -> vector<8x128xf32>
    %c0_41 = arith.constant 0 : index
    %c0_42 = arith.constant 0 : index
    %201 = vector.load %arg5[%c0_41, %c0_42] : memref<1x128xf32, #tpu.memory_space<vmem>>, vector<1x128xf32>
    %202 = vector.broadcast %201 : vector<1x128xf32> to vector<8x128xf32>
    %203 = arith.addf %200, %202 : vector<8x128xf32>
    %c0_43 = arith.constant 0 : index
    %c0_44 = arith.constant 0 : index
    %204 = vector.load %arg6[%c0_43, %c0_44] : memref<8x128xf32, #tpu.memory_space<vmem>>, vector<8x128xf32>
    tpu.vector_store %arg6[%c0_43, %c0_44], %203 {strides = array<i32>} : memref<8x128xf32, #tpu.memory_space<vmem>>, vector<8x128xf32>,
    return
  }
}

</mosaic_0001>

<bundles_post_ra>
// kernel: rnn_shakespeare_forward.1
= control target key start
LH: loop header
LB: loop body
LE: loop exit
PB: predicated region body
PF: predicated region fallthrough
CT: control target
= control target key end

     0   :  { %11 = vsyncpa [#allocation3], 0  ;;  %s1951_s0 = inlined_call_operand.vmem [shape: s32[72,1], index: 0, kind: input, shape index: {}]   ;;  %s1952_s1 = inlined_call_operand.hbm [shape: f32[128,256], index: 1, kind: input, shape index: {}]   ;;  %s1953_s2 = inlined_call_operand.vmem [shape: f32[1,256], index: 2, kind: input, shape index: {}]   ;;  %s1954_s3 = inlined_call_operand.vmem [shape: f32[64,256], index: 3, kind: input, shape index: {}]   ;;  %s1955_s4 = inlined_call_operand.hbm [shape: f32[32,128], index: 4, kind: input, shape index: {}]   ;;  %s1956_s5 = inlined_call_operand.vmem [shape: f32[1,128], index: 5, kind: input, shape index: {}]   ;;  %s1957_s6 = inlined_call_operand.vmem [shape: f32[8,128], index: 6, kind: output, shape index: {}]  }
   0x1   :  { %12 = vsyncpa [#allocation5], 0  ;;  %s1551_s21 = smov [#allocation2]   ;;  %s1503_s25 = scalar_lea.hbm %s1952_s1, 4096 }
   0x2   :  { %s20_s22 = sshll.u32 %s1551_s21, 4  ;;  %p1504_p0 = scmp.ne.s32.totalorder %s1952_s1, %s1503_s25  ;;  %s21_s22 = int_to_ptr.vmem [resolvable:$true] %s20_s22 }
   0x3   :  { %p1507_p1 = scmp.lt.u32.totalorder %s1503_s25, %s1952_s1 }
   0x5   :  { %p1509_p2 = pnand %p1507_p1, %p1504_p0 }
   0x7   :  { %1512 = shalt.err (!%p1509_p2)
}
   0x8   :  { %s1513_s30 = scalar_lea.vmem %s21_s22, 4096  ;;  %p1518_p4 = scmp.lt.s32.totalorder %s21_s22, %s21_s22 }
   0x9   :  { %p1514_p3 = scmp.ne.s32.totalorder %s21_s22, %s1513_s30  ;;  %p1519_p5 = scmp.lt.s32.totalorder %s1513_s30, %s1513_s30 }
   0xb   :  { %p1520_p6 = por %p1519_p5, %p1518_p4 }
   0xd   :  { %p1521_p7 = pnand %p1520_p6, %p1514_p3 }
   0xf   :  { %1524 = shalt.err (!%p1521_p7)
}
  0x10   :  { %s1552_s7 = smov 256   ;;  %s1553_s8 = smov 16  }
  0x11   :  { %26 = dma.hbm_to_vmem [thread:$0]  %s1952_s1, 4096, %s21_s22, [#allocation3], %s1552_s7, %s1552_s7, %s1553_s8  }
  0x12   :  { %s1554_s11 = smov [#allocation4]   ;;  %s1525_s15 = scalar_lea.hbm %s1955_s4, 512 }
  0x13   :  { %s36_s12 = sshll.u32 %s1554_s11, 4  ;;  %p1526_p8 = scmp.ne.s32.totalorder %s1955_s4, %s1525_s15  ;;  %s37_s12 = int_to_ptr.vmem [resolvable:$true] %s36_s12 }
  0x14   :  { %p1529_p9 = scmp.lt.u32.totalorder %s1525_s15, %s1955_s4 }
  0x16   :  { %p1531_p10 = pnand %p1529_p9, %p1526_p8 }
  0x18   :  { %1534 = shalt.err (!%p1531_p10)
}
  0x19   :  { %s1535_s20 = scalar_lea.vmem %s37_s12, 512  ;;  %p1540_p12 = scmp.lt.s32.totalorder %s37_s12, %s37_s12 }
  0x1a   :  { %p1536_p11 = scmp.ne.s32.totalorder %s37_s12, %s1535_s20  ;;  %p1541_p13 = scmp.lt.s32.totalorder %s1535_s20, %s1535_s20 }
  0x1c   :  { %p1542_p0 = por %p1541_p13, %p1540_p12 }
  0x1e   :  { %p1543_p1 = pnand %p1542_p0, %p1536_p11 }
  0x20   :  { %1546 = shalt.err (!%p1543_p1)
}
  0x21   :  { %s1555_s1 = smov 128   ;;  %s1556_s21 = smov 8  }
  0x22   :  { %42 = dma.hbm_to_vmem [thread:$0]  %s1955_s4, 512, %s37_s12, [#allocation5], %s1555_s1, %s1555_s1, %s1556_s21  }
  0x23   :  { %1547 = dma.done.wait [#allocation3], 4096  }
  0x24   :  { %1548 = vsyncadd [#allocation3], 4294963200 }
  0x25   :  { %1549 = dma.done.wait [#allocation5], 512  }
  0x26   :  { %1550 = vsyncadd [#allocation5], 4294966784  ;;  %v1557_v0 = vmov 0   ;;  %v51_v1 = vld [vmem:[%s1951_s0] sm:$0xff]  ;;  %v117_v2 = vld [vmem:[#allocation2 + $0x8] sm:$0xff]  ;;  %v1558_v8 = vmov 0.0   ;;  %v60_v51 = vlaneseq }
  0x27   :  { %1447 = vset.pattern.permute.xlu0 %v1557_v0  ;;  %1448 = vset.pattern.permute.xlu1 %v1557_v0  ;;  %v119_v3 = vld [vmem:[#allocation2 + $0x18] sm:$0xff]  ;;  %v116_v5 = vld [vmem:[#allocation2] sm:$0xff]  ;;  %v118_v6 = vld [vmem:[#allocation2 + $0x10] sm:$0xff]  ;;  %v1559_v54 = vmov 1.0   ;;  %vm334_vm11 = vcmask 523264   ;;  %vm1563_vm12 = vmmov 0  }
  0x28   :  { %63 = vperm.xlu0 %1447, %v51_v1   ;;  %v1235_v4 = vpack.c.bf16 %v119_v3, %v117_v2  ;;  %v121_v7 = vld [vmem:[#allocation2 + $0x28] sm:$0xff]  ;;  %224 = vmatprep.mubr.f32.mxu1 %v1558_v8  ;;  %v1237_v9 = vpack.c.bf16 %v118_v6, %v116_v5  ;;  %v123_v10 = vld [vmem:[#allocation2 + $0x38] sm:$0xff]  ;;  %v120_v11 = vld [vmem:[#allocation2 + $0x20] sm:$0xff]  ;;  %v1629_v52 = vand.u32 127, %v60_v51  ;;  %v151_v60 = vshrl.u32 %v60_v51, 7 }
  0x29   :  { %v122_v12 = vld [vmem:[#allocation2 + $0x30] sm:$0xff]  ;;  %596 = vmatprep.mubr.f32.mxu0 %v1558_v8  ;;  %v1239_v13 = vpack.c.bf16 %v123_v10, %v121_v7  ;;  %v125_v14 = vld [vmem:[#allocation2 + $0x48] sm:$0xff]  ;;  %v127_v15 = vld [vmem:[#allocation2 + $0x58] sm:$0xff]  ;;  %v1560_v6 = vmov 0.5   ;;  %vm1111_vm13 = vcmask 261120  }
  0x2a   :  { %1236 = vmatprep.subr.bf16.mxu1 %v1235_v4  ;;  %v1241_v16 = vpack.c.bf16 %v122_v12, %v120_v11  ;;  %v1243_v17 = vpack.c.bf16 %v127_v15, %v125_v14  ;;  %v124_v18 = vld [vmem:[#allocation2 + $0x40] sm:$0xff]  ;;  %v126_v19 = vld [vmem:[#allocation2 + $0x50] sm:$0xff]  ;;  %v129_v20 = vld [vmem:[#allocation2 + $0x68] sm:$0xff]  ;;  %v152_v61 = vsub.s32 0, %v151_v60  ;;  %v156_v63 = vsub.s32 1, %v151_v60 }
  0x2b   :  { %1238 = vmatpush1.bf16.msra.mxu1 %v1237_v9  ;;  %v131_v21 = vld [vmem:[#allocation2 + $0x78] sm:$0xff]  ;;  %v1245_v22 = vpack.c.bf16 %v126_v19, %v124_v18  ;;  %v128_v24 = vld [vmem:[#allocation2 + $0x60] sm:$0xff]  ;;  %v130_v25 = vld [vmem:[#allocation2 + $0x70] sm:$0xff]  ;;  %v1653_v0 = vadd.s32 128, %v1629_v52  ;;  %vm304_vm10 = vcmp.lt.s32.totalorder %v1629_v52, 32 }
  0x2c   :  { %1240 = vmatprep.subr.bf16.mxu1 %v1239_v13  ;;  %v1247_v23 = vpack.c.bf16 %v131_v21, %v129_v20  ;;  %v133_v26 = vld [vmem:[#allocation2 + $0x88] sm:$0xff]  ;;  %v135_v27 = vld [vmem:[#allocation2 + $0x98] sm:$0xff]  ;;  %v1249_v28 = vpack.c.bf16 %v130_v25, %v128_v24  ;;  %v132_v30 = vld [vmem:[#allocation2 + $0x80] sm:$0xff] }
  0x2d   :  { %v1251_v29 = vpack.c.bf16 %v135_v27, %v133_v26  ;;  %v134_v31 = vld [vmem:[#allocation2 + $0x90] sm:$0xff]  ;;  %v137_v32 = vld [vmem:[#allocation2 + $0xa8] sm:$0xff]  ;;  %v139_v33 = vld [vmem:[#allocation2 + $0xb8] sm:$0xff]  ;;  %vm299_vm1 = vcmp.lt.s32.totalorder %v1653_v0, 192 }
  0x2e   :  { %v1253_v34 = vpack.c.bf16 %v134_v31, %v132_v30  ;;  %v1255_v35 = vpack.c.bf16 %v139_v33, %v137_v32  ;;  %v136_v36 = vld [vmem:[#allocation2 + $0xa0] sm:$0xff]  ;;  %v138_v37 = vld [vmem:[#allocation2 + $0xb0] sm:$0xff]  ;;  %v141_v38 = vld [vmem:[#allocation2 + $0xc8] sm:$0xff]  ;;  %v1663_v7 = vsel %vm299_vm1, 1.0, %v1560_v6 }
  0x2f   :  { %1242 = vmatpush1.bf16.msra.mxu1 %v1241_v16  ;;  %v143_v39 = vld [vmem:[#allocation2 + $0xd8] sm:$0xff]  ;;  %v1257_v40 = vpack.c.bf16 %v138_v37, %v136_v36  ;;  %v140_v42 = vld [vmem:[#allocation2 + $0xc0] sm:$0xff]  ;;  %v142_v43 = vld [vmem:[#allocation2 + $0xd0] sm:$0xff] }
  0x30   :  { %1244 = vmatprep.subr.bf16.mxu1 %v1243_v17  ;;  %v1259_v41 = vpack.c.bf16 %v143_v39, %v141_v38  ;;  %v145_v44 = vld [vmem:[#allocation2 + $0xe8] sm:$0xff]  ;;  %v147_v45 = vld [vmem:[#allocation2 + $0xf8] sm:$0xff]  ;;  %v1261_v46 = vpack.c.bf16 %v142_v43, %v140_v42  ;;  %v144_v48 = vld [vmem:[#allocation2 + $0xe0] sm:$0xff] }
  0x31   :  { %v1263_v47 = vpack.c.bf16 %v147_v45, %v145_v44  ;;  %v146_v49 = vld [vmem:[#allocation2 + $0xf0] sm:$0xff]  ;;  %v52_v55 = vld [vmem:[%s1951_s0 + $0x8] sm:$0xff]  ;;  %v55_v57 = vld [vmem:[%s1951_s0 + $0x20] sm:$0xff] }
  0x32   :  { %v1265_v50 = vpack.c.bf16 %v146_v49, %v144_v48  ;;  %66 = vperm.xlu1 %1448, %v52_v55   ;;  %v53_v56 = vld [vmem:[%s1951_s0 + $0x10] sm:$0xff]  ;;  %v59_v59 = vld [vmem:[%s1951_s0 + $0x40] sm:$0xff]  ;;  %v58_v24 = vld [vmem:[%s1951_s0 + $0x38] sm:$0xff] }
  0x33   :  { %1246 = vmatpush1.bf16.msra.mxu1 %v1245_v22  ;;  %v57_v58 = vld [vmem:[%s1951_s0 + $0x30] sm:$0xff]  ;;  %v148_v62 = vld [vmem:[%s1953_s2] sm:$0x3]  ;;  %s1561_s2 = smov 64   ;;  %v54_v22 = vld [vmem:[%s1951_s0 + $0x18] sm:$0xff] }
  0x34   :  { %1248 = vmatprep.subr.bf16.mxu1 %v1247_v23  ;;  %v1655_v1 = vrot.slane %v148_v62, %v152_v61  ;;  %v1657_v2 = vrot.slane %v148_v62, %v156_v63  ;;  %v56_v23 = vld [vmem:[%s1951_s0 + $0x28] sm:$0xff]  ;;  %v282_v26 = vld [vmem:[%s1954_s3 + $0x18] sm:$0xff]  ;;  %v279_v27 = vld [vmem:[%s1954_s3] sm:$0xff] }
  0x35   :  { %v280_v25 = vld [vmem:[%s1954_s3 + $0x8] sm:$0xff]  ;;  %v286_v32 = vld [vmem:[%s1954_s3 + $0x38] sm:$0xff]  ;;  %v283_v33 = vld [vmem:[%s1954_s3 + $0x20] sm:$0xff] }
  0x36   :  { %69 = vperm.xlu1 %1448, %v53_v56   ;;  %v284_v31 = vld [vmem:[%s1954_s3 + $0x28] sm:$0xff]  ;;  %v290_v37 = vld [vmem:[%s1954_s3 + $0x58] sm:$0xff]  ;;  %v291_v45 = vld [vmem:[%s1954_s3 + $0x60] sm:$0xff] }
  0x37   :  { %1250 = vmatpush1.bf16.msra.mxu1 %v1249_v28  ;;  %v1697_v28 = vpack.c.bf16 %v282_v26, %v280_v25  ;;  %v288_v36 = vld [vmem:[%s1954_s3 + $0x48] sm:$0xff]  ;;  %v294_v44 = vld [vmem:[%s1954_s3 + $0x78] sm:$0xff] }
  0x38   :  { %1252 = vmatprep.subr.bf16.mxu1 %v1251_v29  ;;  %v281_v29 = vld [vmem:[%s1954_s3 + $0x10] sm:$0xff]  ;;  %v1730_v39 = vpack.c.bf16 %v290_v37, %v288_v36  ;;  %v292_v43 = vld [vmem:[%s1954_s3 + $0x68] sm:$0xff] }
  0x39   :  { %v1702_v30 = vpack.c.bf16 %v281_v29, %v279_v27  ;;  %1300 = vmatprep.subr.bf16.mxu0 %v1697_v28 }
  0x3a   :  { %75 = vperm.xlu1 %1448, %v55_v57  }
  0x3b   :  { %1254 = vmatpush1.bf16.msra.mxu1 %v1253_v34  ;;  %1302 = vmatpush1.bf16.msra.mxu0 %v1702_v30  ;;  %v1717_v34 = vpack.c.bf16 %v286_v32, %v284_v31 }
  0x3c   :  { %1256 = vmatprep.subr.bf16.mxu1 %v1255_v35  ;;  %v285_v35 = vld [vmem:[%s1954_s3 + $0x30] sm:$0xff] }
  0x3d   :  { %v1728_v38 = vpack.c.bf16 %v285_v35, %v283_v33  ;;  %1304 = vmatprep.subr.bf16.mxu0 %v1717_v34 }
  0x3e   :  { %81 = vperm.xlu1 %1448, %v57_v58  }
  0x3f   :  { %1258 = vmatpush1.bf16.msra.mxu1 %v1257_v40  ;;  %v287_v40 = vld [vmem:[%s1954_s3 + $0x40] sm:$0xff]  ;;  %1306 = vmatpush1.bf16.msra.mxu0 %v1728_v38 }
  0x40   :  { %1260 = vmatprep.subr.bf16.mxu1 %v1259_v41  ;;  %v289_v41 = vld [vmem:[%s1954_s3 + $0x50] sm:$0xff]  ;;  %1308 = vmatprep.subr.bf16.mxu0 %v1730_v39 }
  0x41   :  { %v1741_v42 = vpack.c.bf16 %v289_v41, %v287_v40 }
  0x42   :  { %87 = vperm.xlu1 %1448, %v59_v59  }
  0x43   :  { %1262 = vmatpush1.bf16.msra.mxu1 %v1261_v46  ;;  %1310 = vmatpush1.bf16.msra.mxu0 %v1741_v42  ;;  %v1757_v46 = vpack.c.bf16 %v294_v44, %v292_v43 }
  0x44   :  { %1264 = vmatprep.subr.bf16.mxu1 %v1263_v47  ;;  %v293_v47 = vld [vmem:[%s1954_s3 + $0x70] sm:$0xff]  ;;  %s1564_s3 = smov 32  }
  0x45   :  { %v1762_v48 = vpack.c.bf16 %v293_v47, %v291_v45  ;;  %1312 = vmatprep.subr.bf16.mxu0 %v1757_v46 }
  0x47   :  { %1266 = vmatpush1.bf16.msra.mxu1 %v1265_v50  ;;  %1314 = vmatpush1.bf16.msra.mxu0 %v1762_v48 }
  0x48   :  { %1268 = vmatprep.subr.bf16.mxu1 %v1697_v28  ;;  %1316 = vmatprep.subr.bf16.mxu0 %v1697_v28 }
  0xa7   :  { %v64_v53 = vpop.permute.xlu0 %63 }
  0xa8   :  { %vm89_vm0 = vcmp.eq.s32.totalorder %v64_v53, %v1629_v52 }
  0xa9   :  { %1200 = vmatmul.mubr.msk.f32.vlgmr.msra.gmra.mrb[0].mxu1 %vm89_vm0, %v1559_v54 }
  0xaa   :  { %230 = vmatprep.mubr.f32.mxu1 %v1558_v8  ;;  %1270 = vmatpush1.bf16.msra.mxu1 %v1702_v30 }
  0xab   :  { %1272 = vmatprep.subr.bf16.mxu1 %v1717_v34 }
  0xae   :  { %1274 = vmatpush1.bf16.msra.mxu1 %v1728_v38 }
  0xaf   :  { %1276 = vmatprep.subr.bf16.mxu1 %v1730_v39 }
  0xb1   :  { %v67_v16 = vpop.permute.xlu1 %66 }
  0xb2   :  { %vm90_vm2 = vcmp.eq.s32.totalorder %v67_v16, %v1629_v52  ;;  %1278 = vmatpush1.bf16.msra.mxu1 %v1741_v42 }
  0xb3   :  { %1201 = vmatmul.mubr.msk.f32.gmra.mrb[2].mxu1 %vm90_vm2, %v1559_v54  ;;  %1280 = vmatprep.subr.bf16.mxu1 %v1757_v46 }
  0xb4   :  { %236 = vmatprep.mubr.f32.mxu1 %v1558_v8 }
  0xb5   :  { %v70_v21 = vpop.permute.xlu1 %69 }
  0xb6   :  { %vm91_vm3 = vcmp.eq.s32.totalorder %v70_v21, %v1629_v52  ;;  %1282 = vmatpush1.bf16.msra.mxu1 %v1762_v48 }
  0xb7   :  { %1202 = vmatmul.mubr.msk.f32.gmra.mrb[4].mxu1 %vm91_vm3, %v1559_v54  ;;  %1284 = vmatprep.subr.bf16.mxu1 %v1697_v28 }
  0xb8   :  { %242 = vmatprep.mubr.f32.mxu1 %v1558_v8 }
  0xb9   :  { %v76_v57 = vpop.permute.xlu1 %75 }
  0xba   :  { %vm93_vm5 = vcmp.eq.s32.totalorder %v76_v57, %v1629_v52 }
  0xbd   :  { %v82_v59 = vpop.permute.xlu1 %81 }
  0xbe   :  { %vm95_vm7 = vcmp.eq.s32.totalorder %v82_v59, %v1629_v52 }
  0xc1   :  { %v88_v61 = vpop.permute.xlu1 %87 }
  0xc2   :  { %vm97_vm9 = vcmp.eq.s32.totalorder %v88_v61, %v1629_v52 }
 0x17c   :  { %v226_v3 = vpop.f32.mrb[0].mxu1 }
 0x17d   :  { %v227_v4 = vadd.f32 %v226_v3, %v1655_v1  ;;  %v228_v5 = vpop.f32.mrb[1].mxu1 }
 0x17e   :  { %v229_v9 = vadd.f32 %v228_v5, %v1657_v2 }
 0x17f   :  { %v305_v10 = vmul.f32 0.5, %v227_v4 }
 0x180   :  { %v306_v11 = vmul.f32 %v1663_v7, %v229_v9 }
 0x181   :  { %1449 = vtanh.f32 %v305_v10 }
 0x182   :  { %1451 = vtanh.f32 %v306_v11 }
 0x18b   :  { %v1450_v12 = vpop.eup %1449 }
 0x18c   :  { %v1452_v13 = vpop.eup %1451  ;;  %v309_v14 = vmul.f32 0.5, %v1450_v12 }
 0x18d   :  { %v310_v15 = vmul.f32 0.5, %v1452_v13 }
 0x18e   :  { %v311_v18 = vadd.f32 0.5, %v309_v14 }
 0x18f   :  { %v312_v17 = vadd.f32 0.5, %v310_v15 }
 0x190   :  { %v315_v49 = vmul.f32 0.0, %v311_v18 }
 0x191   :  { %v1671_v19 = vsel %vm299_vm1, %v1452_v13, %v312_v17 }
 0x192   :  { %v316_v20 = vmul.f32 %v1671_v19, %v311_v18 }
 0x194   :  { %318 = vrot.lane.b32.xlu0 %v316_v20, %s1561_s2 }
 0x198   :  { %72 = vperm.xlu0 %1447, %v54_v22  }
 0x19c   :  { %78 = vperm.xlu0 %1447, %v56_v23  }
 0x1a0   :  { %84 = vperm.xlu0 %1447, %v58_v24  }
 0x206   :  { %v319_v50 = vpop.permute.xlu0 %318 }
 0x207   :  { %v321_v51 = vadd.f32 %v319_v50, %v315_v49 }
 0x209   :  { %1453 = vtanh.f32 %v321_v51  ;;  %330 = vrot.lane.b32.xlu1 %v321_v51, %s1561_s2 }
 0x213   :  { %v1454_v53 = vpop.eup %1453 }
 0x214   :  { %v323_v55 = vmul.f32 %v1454_v53, %v1671_v19 }
 0x216   :  { %325 = vrot.lane.b32.xlu0 %v323_v55, %s1561_s2 }
 0x217   :  { %v73_v56 = vpop.permute.xlu0 %72 }
 0x218   :  { %vm92_vm4 = vcmp.eq.s32.totalorder %v73_v56, %v1629_v52 }
 0x219   :  { %1203 = vmatmul.mubr.msk.f32.gmra.mrb[6].mxu1 %vm92_vm4, %v1559_v54 }
 0x21a   :  { %248 = vmatprep.mubr.f32.mxu1 %v1558_v8 }
 0x21b   :  { %v79_v58 = vpop.permute.xlu0 %78 }
 0x21c   :  { %vm94_vm6 = vcmp.eq.s32.totalorder %v79_v58, %v1629_v52 }
 0x21d   :  { %1204 = vmatmul.mubr.msk.f32.gmra.mrb[8].mxu1 %vm93_vm5, %v1559_v54 }
 0x21e   :  { %254 = vmatprep.mubr.f32.mxu1 %v1558_v8 }
 0x21f   :  { %v85_v60 = vpop.permute.xlu0 %84 }
 0x220   :  { %vm96_vm8 = vcmp.eq.s32.totalorder %v85_v60, %v1629_v52 }
 0x221   :  { %1205 = vmatmul.mubr.msk.f32.gmra.mrb[10].mxu1 %vm94_vm6, %v1559_v54 }
 0x222   :  { %260 = vmatprep.mubr.f32.mxu1 %v1558_v8 }
 0x225   :  { %1206 = vmatmul.mubr.msk.f32.gmra.mrb[12].mxu1 %vm95_vm7, %v1559_v54 }
 0x226   :  { %266 = vmatprep.mubr.f32.mxu1 %v1558_v8 }
 0x229   :  { %1207 = vmatmul.mubr.msk.f32.gmra.mrb[14].mxu1 %vm96_vm8, %v1559_v54 }
 0x22a   :  { %272 = vmatprep.mubr.f32.mxu1 %v1558_v8 }
 0x22d   :  { %1208 = vmatmul.mubr.msk.f32.gmra.mrb[16].mxu1 %vm97_vm9, %v1559_v54 }
 0x22e   :  { %402 = vmatprep.mubr.f32.mxu1 %v1558_v8 }
 0x27b   :  { %v331_v62 = vpop.permute.xlu1 %330 }
 0x27c   :  { %v333_v63 = vsel %vm304_vm10, %v331_v62, 0.0 }
 0x27d   :  { %420 = vrot.lane.b32.xlu0 %v333_v63, %s1561_s2 }
 0x288   :  { %v326_v3 = vpop.permute.xlu0 %325 }
 0x289   :  { %v328_v4 = vsel %vm304_vm10, %v326_v3, 0.0 }
 0x28a   :  { %1209 = vmatmul.mubr.msk.f32.vlgmr.msra.gmra.mrb[2].mxu1 %vm334_vm11, %v328_v4 }
 0x28b   :  { %1286 = vmatpush1.bf16.msra.mxu1 %v1702_v30  ;;  %501 = vmatprep.mubr.f32.mxu1 %v1558_v8 }
 0x28c   :  { %1288 = vmatprep.subr.bf16.mxu1 %v1717_v34 }
 0x28f   :  { %1290 = vmatpush1.bf16.msra.mxu1 %v1728_v38 }
 0x290   :  { %1292 = vmatprep.subr.bf16.mxu1 %v1730_v39 }
 0x293   :  { %1294 = vmatpush1.bf16.msra.mxu1 %v1741_v42 }
 0x294   :  { %1296 = vmatprep.subr.bf16.mxu1 %v1757_v46 }
 0x297   :  { %1298 = vmatpush1.bf16.msra.mxu1 %v1762_v48 }
 0x2ec   :  { %v1802_v52 = vpop.f32.mrb[6].mxu1 }
 0x2ed   :  { %v1804_v54 = vpop.f32.mrb[7].mxu1 }
 0x2ef   :  { %v421_v33 = vpop.permute.xlu0 %420 }
 0x2f0   :  { %v1806_v5 = vpop.f32.mrb[8].mxu1 }
 0x2f1   :  { %v1808_v6 = vpop.f32.mrb[9].mxu1 }
 0x2f4   :  { %v1810_v9 = vpop.f32.mrb[10].mxu1 }
 0x2f5   :  { %v1812_v10 = vpop.f32.mrb[11].mxu1 }
 0x2f8   :  { %v1814_v11 = vpop.f32.mrb[12].mxu1 }
 0x2f9   :  { %v1816_v12 = vpop.f32.mrb[13].mxu1 }
 0x2fc   :  { %v1818_v13 = vpop.f32.mrb[14].mxu1 }
 0x2fd   :  { %v1820_v14 = vpop.f32.mrb[15].mxu1 }
 0x300   :  { %v1822_v15 = vpop.f32.mrb[16].mxu1 }
 0x301   :  { %v1824_v16 = vpop.f32.mrb[17].mxu1 }
 0x35d   :  { %v404_v17 = vpop.f32.mrb[2].mxu1 }
 0x35e   :  { %v1401_v18 = vadd.f32 %v404_v17, %v1655_v1  ;;  %v406_v19 = vpop.f32.mrb[3].mxu1 }
 0x35f   :  { %v1402_v20 = vadd.f32 %v406_v19, %v1657_v2  ;;  %v245_v19 = vadd.f32 %v1802_v52, %v1655_v1 }
 0x360   :  { %v409_v21 = vmul.f32 0.5, %v1401_v18 }
 0x361   :  { %v410_v22 = vmul.f32 %v1402_v20, %v1663_v7  ;;  %v247_v20 = vadd.f32 %v1804_v54, %v1657_v2 }
 0x362   :  { %1455 = vtanh.f32 %v409_v21 }
 0x363   :  { %1457 = vtanh.f32 %v410_v22 }
 0x36c   :  { %v1456_v23 = vpop.eup %1455 }
 0x36d   :  { %v1458_v24 = vpop.eup %1457  ;;  %v413_v25 = vmul.f32 0.5, %v1456_v23 }
 0x36e   :  { %v414_v26 = vmul.f32 0.5, %v1458_v24 }
 0x36f   :  { %v415_v29 = vadd.f32 0.5, %v413_v25 }
 0x370   :  { %v416_v27 = vadd.f32 0.5, %v414_v26 }
 0x371   :  { %v423_v35 = vmul.f32 %v421_v33, %v415_v29 }
 0x372   :  { %v418_v31 = vsel %vm299_vm1, %v1458_v24, %v416_v27 }
 0x373   :  { %v424_v32 = vmul.f32 %v418_v31, %v415_v29 }
 0x375   :  { %426 = vrot.lane.b32.xlu1 %v424_v32, %s1561_s2 }
 0x3e7   :  { %v427_v36 = vpop.permute.xlu1 %426 }
 0x3e8   :  { %v429_v37 = vadd.f32 %v427_v36, %v423_v35 }
 0x3ea   :  { %1459 = vtanh.f32 %v429_v37 }
 0x3f4   :  { %v1460_v40 = vpop.eup %1459 }
 0x3f5   :  { %v431_v41 = vmul.f32 %v1460_v40, %v418_v31 }
 0x3f7   :  { %433 = vrot.lane.b32.xlu0 %v431_v41, %s1561_s2 }
 0x469   :  { %v434_v43 = vpop.permute.xlu0 %433 }
 0x46a   :  { %1210 = vmatmul.mubr.msk.f32.vlgmr.msra.gmra.mrb[4].mxu1 %vm334_vm11, %v434_v43 }
 0x46b   :  { %1232 = vmatprep.mubr.msk.f32.mxu1 %vm1563_vm12, %v1558_v8 }
 0x53d   :  { %v503_v44 = vpop.f32.mrb[4].mxu1 }
 0x53e   :  { %v1403_v45 = vadd.f32 %v503_v44, %v1655_v1  ;;  %v505_v47 = vpop.f32.mrb[5].mxu1 }
 0x53f   :  { %v1404_v49 = vadd.f32 %v505_v47, %v1657_v2  ;;  %v253_v47 = vadd.f32 %v1808_v6, %v1657_v2 }
 0x540   :  { %v508_v50 = vmul.f32 0.5, %v1403_v45  ;;  %v251_v45 = vadd.f32 %v1806_v5, %v1655_v1 }
 0x541   :  { %v509_v51 = vmul.f32 %v1404_v49, %v1663_v7 }
 0x542   :  { %1461 = vtanh.f32 %v508_v50 }
 0x543   :  { %1463 = vtanh.f32 %v509_v51 }
 0x54c   :  { %v1462_v53 = vpop.eup %1461 }
 0x54d   :  { %v1464_v55 = vpop.eup %1463  ;;  %v512_v56 = vmul.f32 0.5, %v1462_v53 }
 0x54e   :  { %v513_v57 = vmul.f32 0.5, %v1464_v55 }
 0x54f   :  { %v514_v59 = vadd.f32 0.5, %v512_v56 }
 0x550   :  { %v515_v58 = vadd.f32 0.5, %v513_v57 }
 0x551   :  { %v518_v62 = vmul.f32 %v514_v59, %v429_v37 }
 0x552   :  { %v517_v60 = vsel %vm299_vm1, %v1464_v55, %v515_v58 }
 0x553   :  { %v519_v61 = vmul.f32 %v517_v60, %v514_v59 }
 0x555   :  { %521 = vrot.lane.b32.xlu1 %v519_v61, %s1561_s2 }
 0x5c7   :  { %v522_v63 = vpop.permute.xlu1 %521 }
 0x5c8   :  { %v524_v3 = vadd.f32 %v522_v63, %v518_v62 }
 0x5ca   :  { %1465 = vtanh.f32 %v524_v3 }
 0x5d4   :  { %v1466_v4 = vpop.eup %1465 }
 0x5d5   :  { %v526_v17 = vmul.f32 %v1466_v4, %v517_v60 }
 0x5d7   :  { %528 = vrot.lane.b32.xlu0 %v526_v17, %s1561_s2 }
 0x649   :  { %v529_v18 = vpop.permute.xlu0 %528 }
 0x64a   :  { %1211 = vmatmul.mubr.msk.f32.vlgmr.msra.gmra.mrb[0].mxu0 %vm334_vm11, %v529_v18 }
 0x64b   :  { %1318 = vmatpush1.bf16.msra.mxu0 %v1702_v30  ;;  %691 = vmatprep.mubr.f32.mxu0 %v1558_v8 }
 0x64c   :  { %1320 = vmatprep.subr.bf16.mxu0 %v1717_v34 }
 0x64f   :  { %1322 = vmatpush1.bf16.msra.mxu0 %v1728_v38 }
 0x650   :  { %1324 = vmatprep.subr.bf16.mxu0 %v1730_v39 }
 0x653   :  { %1326 = vmatpush1.bf16.msra.mxu0 %v1741_v42 }
 0x654   :  { %1328 = vmatprep.subr.bf16.mxu0 %v1757_v46 }
 0x657   :  { %1330 = vmatpush1.bf16.msra.mxu0 %v1762_v48 }
 0x658   :  { %1332 = vmatprep.subr.bf16.mxu0 %v1697_v28 }
 0x71d   :  { %v598_v21 = vpop.f32.mrb[0].mxu0 }
 0x71e   :  { %v599_v22 = vadd.f32 %v598_v21, %v245_v19  ;;  %v600_v23 = vpop.f32.mrb[1].mxu0  ;;  %v259_v21 = vadd.f32 %v1812_v10, %v1657_v2 }
 0x71f   :  { %v601_v24 = vadd.f32 %v600_v23, %v247_v20  ;;  %v257_v20 = vadd.f32 %v1810_v9, %v1655_v1 }
 0x720   :  { %v603_v25 = vmul.f32 0.5, %v599_v22 }
 0x721   :  { %v604_v26 = vmul.f32 %v601_v24, %v1663_v7 }
 0x722   :  { %1467 = vtanh.f32 %v603_v25 }
 0x723   :  { %1469 = vtanh.f32 %v604_v26 }
 0x72c   :  { %v1468_v27 = vpop.eup %1467 }
 0x72d   :  { %v1470_v29 = vpop.eup %1469  ;;  %v607_v31 = vmul.f32 0.5, %v1468_v27 }
 0x72e   :  { %v608_v32 = vmul.f32 0.5, %v1470_v29 }
 0x72f   :  { %v609_v35 = vadd.f32 0.5, %v607_v31 }
 0x730   :  { %v610_v33 = vadd.f32 0.5, %v608_v32 }
 0x731   :  { %v613_v54 = vmul.f32 %v609_v35, %v524_v3 }
 0x732   :  { %v612_v52 = vsel %vm299_vm1, %v1470_v29, %v610_v33 }
 0x733   :  { %v614_v36 = vmul.f32 %v612_v52, %v609_v35 }
 0x735   :  { %616 = vrot.lane.b32.xlu1 %v614_v36, %s1561_s2 }
 0x7a7   :  { %v617_v37 = vpop.permute.xlu1 %616 }
 0x7a8   :  { %v619_v40 = vadd.f32 %v617_v37, %v613_v54 }
 0x7aa   :  { %1471 = vtanh.f32 %v619_v40 }
 0x7b4   :  { %v1472_v41 = vpop.eup %1471 }
 0x7b5   :  { %v621_v43 = vmul.f32 %v1472_v41, %v612_v52 }
 0x7b7   :  { %623 = vrot.lane.b32.xlu0 %v621_v43, %s1561_s2 }
 0x829   :  { %v624_v44 = vpop.permute.xlu0 %623 }
 0x82a   :  { %1212 = vmatmul.mubr.msk.f32.vlgmr.msra.gmra.mrb[2].mxu0 %vm334_vm11, %v624_v44  ;;  %v263_v44 = vadd.f32 %v1814_v11, %v1655_v1 }
 0x82b   :  { %1334 = vmatpush1.bf16.msra.mxu0 %v1702_v30  ;;  %786 = vmatprep.mubr.f32.mxu0 %v1558_v8 }
 0x82c   :  { %1336 = vmatprep.subr.bf16.mxu0 %v1717_v34 }
 0x82f   :  { %1338 = vmatpush1.bf16.msra.mxu0 %v1728_v38 }
 0x830   :  { %1340 = vmatprep.subr.bf16.mxu0 %v1730_v39 }
 0x833   :  { %1342 = vmatpush1.bf16.msra.mxu0 %v1741_v42 }
 0x834   :  { %1344 = vmatprep.subr.bf16.mxu0 %v1757_v46 }
 0x837   :  { %1346 = vmatpush1.bf16.msra.mxu0 %v1762_v48 }
 0x838   :  { %1348 = vmatprep.subr.bf16.mxu0 %v1697_v28 }
 0x8fd   :  { %v693_v49 = vpop.f32.mrb[2].mxu0 }
 0x8fe   :  { %v694_v50 = vadd.f32 %v693_v49, %v251_v45  ;;  %v695_v51 = vpop.f32.mrb[3].mxu0  ;;  %v265_v45 = vadd.f32 %v1816_v12, %v1657_v2 }
 0x8ff   :  { %v696_v53 = vadd.f32 %v695_v51, %v253_v47 }
 0x900   :  { %v698_v55 = vmul.f32 0.5, %v694_v50 }
 0x901   :  { %v699_v56 = vmul.f32 %v696_v53, %v1663_v7 }
 0x902   :  { %1473 = vtanh.f32 %v698_v55 }
 0x903   :  { %1475 = vtanh.f32 %v699_v56 }
 0x90c   :  { %v1474_v57 = vpop.eup %1473 }
 0x90d   :  { %v1476_v58 = vpop.eup %1475  ;;  %v702_v59 = vmul.f32 0.5, %v1474_v57 }
 0x90e   :  { %v703_v60 = vmul.f32 0.5, %v1476_v58 }
 0x90f   :  { %v704_v62 = vadd.f32 0.5, %v702_v59 }
 0x910   :  { %v705_v61 = vadd.f32 0.5, %v703_v60 }
 0x911   :  { %v708_v6 = vmul.f32 %v704_v62, %v619_v40 }
 0x912   :  { %v707_v5 = vsel %vm299_vm1, %v1476_v58, %v705_v61 }
 0x913   :  { %v709_v63 = vmul.f32 %v707_v5, %v704_v62 }
 0x915   :  { %711 = vrot.lane.b32.xlu1 %v709_v63, %s1561_s2 }
 0x987   :  { %v712_v3 = vpop.permute.xlu1 %711 }
 0x988   :  { %v714_v4 = vadd.f32 %v712_v3, %v708_v6 }
 0x98a   :  { %1477 = vtanh.f32 %v714_v4 }
 0x994   :  { %v1478_v17 = vpop.eup %1477 }
 0x995   :  { %v716_v18 = vmul.f32 %v1478_v17, %v707_v5 }
 0x997   :  { %718 = vrot.lane.b32.xlu0 %v716_v18, %s1561_s2 }
 0xa09   :  { %v719_v19 = vpop.permute.xlu0 %718 }
 0xa0a   :  { %1213 = vmatmul.mubr.msk.f32.vlgmr.msra.gmra.mrb[4].mxu0 %vm334_vm11, %v719_v19 }
 0xa0b   :  { %1350 = vmatpush1.bf16.msra.mxu0 %v1702_v30  ;;  %881 = vmatprep.mubr.f32.mxu0 %v1558_v8 }
 0xa0c   :  { %1352 = vmatprep.subr.bf16.mxu0 %v1717_v34 }
 0xa0f   :  { %1354 = vmatpush1.bf16.msra.mxu0 %v1728_v38 }
 0xa10   :  { %1356 = vmatprep.subr.bf16.mxu0 %v1730_v39 }
 0xa13   :  { %1358 = vmatpush1.bf16.msra.mxu0 %v1741_v42 }
 0xa14   :  { %1360 = vmatprep.subr.bf16.mxu0 %v1757_v46 }
 0xa17   :  { %1362 = vmatpush1.bf16.msra.mxu0 %v1762_v48 }
 0xa18   :  { %1364 = vmatprep.subr.bf16.mxu0 %v1697_v28 }
 0xadd   :  { %v788_v22 = vpop.f32.mrb[4].mxu0 }
 0xade   :  { %v789_v23 = vadd.f32 %v788_v22, %v257_v20  ;;  %v790_v24 = vpop.f32.mrb[5].mxu0 }
 0xadf   :  { %v791_v25 = vadd.f32 %v790_v24, %v259_v21 }
 0xae0   :  { %v793_v26 = vmul.f32 0.5, %v789_v23 }
 0xae1   :  { %v794_v27 = vmul.f32 %v791_v25, %v1663_v7 }
 0xae2   :  { %1479 = vtanh.f32 %v793_v26 }
 0xae3   :  { %1481 = vtanh.f32 %v794_v27 }
 0xaec   :  { %v1480_v29 = vpop.eup %1479 }
 0xaed   :  { %v1482_v31 = vpop.eup %1481  ;;  %v797_v32 = vmul.f32 0.5, %v1480_v29 }
 0xaee   :  { %v798_v33 = vmul.f32 0.5, %v1482_v31 }
 0xaef   :  { %v799_v52 = vadd.f32 0.5, %v797_v32  ;;  %v277_v32 = vadd.f32 %v1824_v16, %v1657_v2  ;;  %v1098_v16 = vld [vmem:[#allocation4 + $0x8] sm:$0xff] }
 0xaf0   :  { %v800_v35 = vadd.f32 0.5, %v798_v33 }
 0xaf1   :  { %v803_v10 = vmul.f32 %v799_v52, %v714_v4  ;;  %v269_v4 = vadd.f32 %v1818_v13, %v1655_v1 }
 0xaf2   :  { %v802_v9 = vsel %vm299_vm1, %v1482_v31, %v800_v35  ;;  %v275_v31 = vadd.f32 %v1822_v15, %v1655_v1 }
 0xaf3   :  { %v804_v36 = vmul.f32 %v802_v9, %v799_v52 }
 0xaf5   :  { %806 = vrot.lane.b32.xlu1 %v804_v36, %s1561_s2 }
 0xb67   :  { %v807_v54 = vpop.permute.xlu1 %806 }
 0xb68   :  { %v809_v37 = vadd.f32 %v807_v54, %v803_v10 }
 0xb6a   :  { %1483 = vtanh.f32 %v809_v37 }
 0xb74   :  { %v1484_v40 = vpop.eup %1483 }
 0xb75   :  { %v811_v41 = vmul.f32 %v1484_v40, %v802_v9 }
 0xb77   :  { %813 = vrot.lane.b32.xlu0 %v811_v41, %s1561_s2 }
 0xbe9   :  { %v814_v43 = vpop.permute.xlu0 %813 }
 0xbea   :  { %1214 = vmatmul.mubr.msk.f32.vlgmr.msra.gmra.mrb[6].mxu0 %vm334_vm11, %v814_v43 }
 0xbeb   :  { %1366 = vmatpush1.bf16.msra.mxu0 %v1702_v30  ;;  %976 = vmatprep.mubr.f32.mxu0 %v1558_v8 }
 0xbec   :  { %1368 = vmatprep.subr.bf16.mxu0 %v1717_v34 }
 0xbef   :  { %1370 = vmatpush1.bf16.msra.mxu0 %v1728_v38 }
 0xbf0   :  { %1372 = vmatprep.subr.bf16.mxu0 %v1730_v39 }
 0xbf3   :  { %1374 = vmatpush1.bf16.msra.mxu0 %v1741_v42 }
 0xbf4   :  { %1376 = vmatprep.subr.bf16.mxu0 %v1757_v46 }
 0xbf7   :  { %1378 = vmatpush1.bf16.msra.mxu0 %v1762_v48 }
 0xbf8   :  { %1380 = vmatprep.subr.bf16.mxu0 %v1697_v28 }
 0xcbd   :  { %v883_v47 = vpop.f32.mrb[6].mxu0 }
 0xcbe   :  { %v884_v49 = vadd.f32 %v883_v47, %v263_v44  ;;  %v885_v50 = vpop.f32.mrb[7].mxu0  ;;  %v1562_v47 = vmov 0.0|0.0  }
 0xcbf   :  { %v886_v51 = vadd.f32 %v885_v50, %v265_v45  ;;  %v1099_v45 = vld [vmem:[#allocation4 + $0x10] sm:$0xff]  ;;  %1395 = vmatprep.subr.bf16.mxu1 %v1562_v47 }
 0xcc0   :  { %v888_v53 = vmul.f32 0.5, %v884_v49  ;;  %v1100_v49 = vld [vmem:[#allocation4 + $0x18] sm:$0xff] }
 0xcc1   :  { %v889_v55 = vmul.f32 %v886_v51, %v1663_v7  ;;  %v1399_v50 = vpack.c.bf16 %v1100_v49, %v1099_v45 }
 0xcc2   :  { %1485 = vtanh.f32 %v888_v53 }
 0xcc3   :  { %1487 = vtanh.f32 %v889_v55 }
 0xccc   :  { %v1486_v56 = vpop.eup %1485 }
 0xccd   :  { %v1488_v57 = vpop.eup %1487  ;;  %v892_v58 = vmul.f32 0.5, %v1486_v56 }
 0xcce   :  { %v893_v59 = vmul.f32 0.5, %v1488_v57 }
 0xccf   :  { %v894_v60 = vadd.f32 0.5, %v892_v58  ;;  %v1217_v58 = vld [vmem:[%s1956_s5] ss:$0 sm:$0xff] }
 0xcd0   :  { %v895_v28 = vadd.f32 0.5, %v893_v59 }
 0xcd1   :  { %v898_v12 = vmul.f32 %v894_v60, %v809_v37 }
 0xcd2   :  { %v897_v11 = vsel %vm299_vm1, %v1488_v57, %v895_v28 }
 0xcd3   :  { %v899_v61 = vmul.f32 %v897_v11, %v894_v60 }
 0xcd5   :  { %901 = vrot.lane.b32.xlu1 %v899_v61, %s1561_s2 }
 0xd47   :  { %v902_v62 = vpop.permute.xlu1 %901 }
 0xd48   :  { %v904_v5 = vadd.f32 %v902_v62, %v898_v12 }
 0xd4a   :  { %1489 = vtanh.f32 %v904_v5 }
 0xd54   :  { %v1490_v63 = vpop.eup %1489 }
 0xd55   :  { %v906_v6 = vmul.f32 %v1490_v63, %v897_v11 }
 0xd57   :  { %908 = vrot.lane.b32.xlu0 %v906_v6, %s1561_s2 }
 0xdc9   :  { %v909_v3 = vpop.permute.xlu0 %908 }
 0xdca   :  { %1215 = vmatmul.mubr.msk.f32.vlgmr.msra.gmra.mrb[8].mxu0 %vm334_vm11, %v909_v3 }
 0xdcb   :  { %1382 = vmatpush1.bf16.msra.mxu0 %v1702_v30  ;;  %1071 = vmatprep.mubr.f32.mxu0 %v1558_v8  ;;  %v271_v30 = vadd.f32 %v1820_v14, %v1657_v2  ;;  %v1097_v2 = vld [vmem:[#allocation4] sm:$0xff] }
 0xdcc   :  { %1384 = vmatprep.subr.bf16.mxu0 %v1717_v34 }
 0xdcf   :  { %1386 = vmatpush1.bf16.msra.mxu0 %v1728_v38 }
 0xdd0   :  { %1388 = vmatprep.subr.bf16.mxu0 %v1730_v39 }
 0xdd3   :  { %1390 = vmatpush1.bf16.msra.mxu0 %v1741_v42 }
 0xdd4   :  { %1392 = vmatprep.subr.bf16.mxu0 %v1757_v46 }
 0xdd7   :  { %1394 = vmatpush1.bf16.msra.mxu0 %v1762_v48 }
 0xe9d   :  { %v978_v17 = vpop.f32.mrb[8].mxu0 }
 0xe9e   :  { %v979_v18 = vadd.f32 %v978_v17, %v269_v4  ;;  %v980_v19 = vpop.f32.mrb[9].mxu0 }
 0xe9f   :  { %v981_v34 = vadd.f32 %v980_v19, %v271_v30 }
 0xea0   :  { %v983_v20 = vmul.f32 0.5, %v979_v18 }
 0xea1   :  { %v984_v38 = vmul.f32 %v981_v34, %v1663_v7 }
 0xea2   :  { %1491 = vtanh.f32 %v983_v20 }
 0xea3   :  { %1493 = vtanh.f32 %v984_v38 }
 0xeac   :  { %v1492_v39 = vpop.eup %1491 }
 0xead   :  { %v1494_v42 = vpop.eup %1493  ;;  %v987_v46 = vmul.f32 0.5, %v1492_v39 }
 0xeae   :  { %v988_v21 = vmul.f32 0.5, %v1494_v42 }
 0xeaf   :  { %v989_v22 = vadd.f32 0.5, %v987_v46 }
 0xeb0   :  { %v990_v48 = vadd.f32 0.5, %v988_v21 }
 0xeb1   :  { %v993_v14 = vmul.f32 %v989_v22, %v904_v5 }
 0xeb2   :  { %v992_v13 = vsel %vm299_vm1, %v1494_v42, %v990_v48 }
 0xeb3   :  { %v994_v23 = vmul.f32 %v992_v13, %v989_v22 }
 0xeb5   :  { %996 = vrot.lane.b32.xlu1 %v994_v23, %s1561_s2 }
 0xf27   :  { %v997_v24 = vpop.permute.xlu1 %996 }
 0xf28   :  { %v999_v25 = vadd.f32 %v997_v24, %v993_v14 }
 0xf2a   :  { %1495 = vtanh.f32 %v999_v25 }
 0xf34   :  { %v1496_v26 = vpop.eup %1495 }
 0xf35   :  { %v1001_v27 = vmul.f32 %v1496_v26, %v992_v13 }
 0xf37   :  { %1003 = vrot.lane.b32.xlu0 %v1001_v27, %s1561_s2 }
 0xfa9   :  { %v1004_v29 = vpop.permute.xlu0 %1003 }
 0xfaa   :  { %1216 = vmatmul.mubr.msk.f32.vlgmr.msra.gmra.mrb[10].mxu0 %vm334_vm11, %v1004_v29 }
0x107d   :  { %v1073_v33 = vpop.f32.mrb[10].mxu0 }
0x107e   :  { %v1074_v35 = vadd.f32 %v1073_v33, %v275_v31  ;;  %v1075_v52 = vpop.f32.mrb[11].mxu0 }
0x107f   :  { %v1076_v9 = vadd.f32 %v1075_v52, %v277_v32 }
0x1080   :  { %v1078_v36 = vmul.f32 0.5, %v1074_v35 }
0x1081   :  { %v1079_v10 = vmul.f32 %v1076_v9, %v1663_v7  ;;  %v1396_v7 = vpack.c.bf16 %v1098_v16, %v1097_v2 }
0x1082   :  { %1497 = vtanh.f32 %v1078_v36 }
0x1083   :  { %1499 = vtanh.f32 %v1079_v10  ;;  %1397 = vmatpush3.bf16.msra.mxu1 %v1396_v7 }
0x1084   :  { %1398 = vmatprep.subr.bf16.mxu1 %v1562_v47 }
0x1087   :  { %1400 = vmatpush3.bf16.msra.mxu1 %v1399_v50 }
0x108c   :  { %v1498_v54 = vpop.eup %1497 }
0x108d   :  { %v1500_v37 = vpop.eup %1499  ;;  %v1082_v40 = vmul.f32 0.5, %v1498_v54 }
0x108e   :  { %v1083_v41 = vmul.f32 0.5, %v1500_v37 }
0x108f   :  { %v1084_v44 = vadd.f32 0.5, %v1082_v40 }
0x1090   :  { %v1085_v43 = vadd.f32 0.5, %v1083_v41 }
0x1091   :  { %v1088_v51 = vmul.f32 %v1084_v44, %v999_v25 }
0x1092   :  { %v1087_v1 = vsel %vm299_vm1, %v1500_v37, %v1085_v43 }
0x1093   :  { %v1089_v15 = vmul.f32 %v1087_v1, %v1084_v44 }
0x1095   :  { %1091 = vrot.lane.b32.xlu1 %v1089_v15, %s1561_s2 }
0x1107   :  { %v1092_v0 = vpop.permute.xlu1 %1091 }
0x1108   :  { %v1094_v53 = vadd.f32 %v1092_v0, %v1088_v51 }
0x110a   :  { %1501 = vtanh.f32 %v1094_v53 }
0x1114   :  { %v1502_v55 = vpop.eup %1501 }
0x1115   :  { %v1096_v56 = vmul.f32 %v1502_v55, %v1087_v1 }
0x1117   :  { %1109 = vrot.lane.b32.xlu0 %v1096_v56, %s1564_s3 }
0x1189   :  { %v1110_v57 = vpop.permute.xlu0 %1109 }
0x118a   :  { %1233 = vmatmul.mubr.msk.f32.vlgmr.msra.gmra.mrb[18].mxu1 %vm1111_vm13, %v1110_v57 }
0x125d   :  { %v1180_v8 = vpop.f32.mrb[18].mxu1 }
0x125e   :  { %v1181_v59 = vadd.f32 %v1217_v58, %v1180_v8  ;;  %v1234_v28 = vpop.f32.mrb[19].mxu1 }
0x1260   :  { %1184 = vst [vmem:[%s1957_s6] sm:$0xff] %v1181_v59 }
0x1261   :  { %1189 = vsyncpa [#allocation3], 1 }
0x1262   :  { %1190 = vsyncpa [#allocation5], 1 }

</bundles_post_ra>
